<compile_context>
chip_gen: v6e
topology: v6e:2x2x1
jax: 0.10.0
libtpu: 0.0.40
codegen_flags: <defaults>
</compile_context>

<pallas_src>
import numpy as np
import jax
import jax.numpy as jnp
from jax.experimental import pallas as pl
from jax.experimental.pallas import tpu as pltpu


def cam_head_kernel(x_ref, w_ref, p_ref, o_ref):
    """One spatial block of the CAM head, both images fused.

    x_ref: (2, C, HWb)  feature block for image 0 and image 1 (flat H*W slice)
    w_ref: (K, C)       classifier weight (1x1 conv == matmul), resident
    p_ref: (HWb, HWb)   permutation matrix reversing W within each H row, resident
    o_ref: (K, HWb)     output block (lane-dense, f32)
    """
    w = w_ref[...]                                                     # (K, C)
    y0 = jnp.maximum(
        jnp.dot(w, x_ref[0], preferred_element_type=jnp.float32), 0.0)  # (K, HWb)
    y1 = jnp.maximum(
        jnp.dot(w, x_ref[1], preferred_element_type=jnp.float32), 0.0)  # (K, HWb)
    # Flip along W (block-local): exact 0/1 permutation matmul on the MXU.
    y1f = jnp.dot(y1, p_ref[...], preferred_element_type=jnp.float32)   # (K, HWb)
    o_ref[...] = y0 + y1f


def cam_forward(feat_nchw, cls_weight, *, num_spatial_blocks=2, compute_dtype=None):
    """CAM head: relu(conv1x1(feat))[0] + relu(conv1x1(feat))[1].flip(-1).

    feat_nchw : (2, C, H, W) float32/bfloat16 — stage4 feature map (NCHW)
    cls_weight: (K, C, 1, 1)                  — nn.Conv2d(C, K, 1, bias=False).weight
    returns   : (K, H, W) float32
    """
    B, C, H, W = feat_nchw.shape
    assert B == 2, "CAM forward combines exactly 2 batch elements (image + flip)"
    K = cls_weight.shape[0]

    if compute_dtype is not None:
        feat_nchw = feat_nchw.astype(compute_dtype)
        cls_weight = cls_weight.astype(compute_dtype)

    # Free reshapes only (no HBM transpose passes).
    x = feat_nchw.reshape(2, C, H * W)          # (2, C, HW)
    w_kc = cls_weight.reshape(K, C)             # (K, C)

    # Spatial split along H so the W-flip stays block-local; keep the output
    # lane dim a multiple of 128 (or fall back to a single full-extent block).
    nb = max(1, min(num_spatial_blocks, H))
    while nb > 1 and (H % nb != 0 or ((H // nb) * W) % 128 != 0):
        nb -= 1
    hwb = (H * W) // nb                          # flat spatial elems per block

    # Permutation matrix that reverses W within each H row of a flat block:
    # flip(y)[:, j] = y[:, src[j]] with j = r*W + w  ->  src[j] = r*W + (W-1-w).
    idx = jnp.arange(hwb)
    src = (idx // W) * W + (W - 1 - idx % W)
    p_flip = (jnp.arange(hwb)[:, None] == src[None, :]).astype(jnp.float32)

    out_flat = pl.pallas_call(
        cam_head_kernel,
        out_shape=jax.ShapeDtypeStruct((K, H * W), jnp.float32),
        grid_spec=pl.GridSpec(
            grid=(nb,),
            in_specs=[
                pl.BlockSpec((2, C, hwb), lambda i: (0, 0, i)),   # both images' block
                pl.BlockSpec((K, C), lambda i: (0, 0)),           # weight, resident
                pl.BlockSpec((hwb, hwb), lambda i: (0, 0)),       # flip perm, resident
            ],
            out_specs=pl.BlockSpec((K, hwb), lambda i: (0, i)),
        ),
        compiler_params=pltpu.CompilerParams(
            dimension_semantics=("parallel",)),
    )(x, w_kc, p_flip)

    return out_flat.reshape(K, H, W)


def cam_reference(feat_nchw, cls_weight):
    """Plain-JAX reference of the same semantics (f32)."""
    K, C = cls_weight.shape[0], cls_weight.shape[1]
    y = jnp.einsum("bchw,kc->bkhw", feat_nchw, cls_weight.reshape(K, C),
                   preferred_element_type=jnp.float32)
    y = jnp.maximum(y, 0.0)
    return y[0] + y[1][:, :, ::-1]


if __name__ == "__main__":
    # Small synthetic shapes consistent with the module's head: stage4 feature
    # map (B=2: image + flipped image), C channels, HxW spatial, classifier
    # weight (n_classes, C, 1, 1).  (Real model uses C=2048; scaled down.)
    B, C, H, W = 2, 512, 16, 16
    n_classes = 20

    key = jax.random.PRNGKey(0)
    k_feat, k_w = jax.random.split(key)
    # Synthetic stage4 features stored in bf16 (simulating a bf16 backbone
    # output, which is where the HBM-traffic halving of this memory-bound
    # head actually materializes).  Accumulation stays f32 in the kernel.
    feat = jax.random.normal(
        k_feat, (B, C, H, W), dtype=jnp.float32).astype(jnp.bfloat16)
    cls_weight = (0.01 * jax.random.normal(
        k_w, (n_classes, C, 1, 1), dtype=jnp.float32)).astype(jnp.bfloat16)

    out = jax.block_until_ready(cam_forward(feat, cls_weight))

    ref = jax.block_until_ready(
        cam_reference(feat.astype(jnp.float32), cls_weight.astype(jnp.float32)))
    assert out.shape == (n_classes, H, W), out.shape
    np.testing.assert_allclose(np.asarray(out), np.asarray(ref),
                               rtol=2e-3, atol=2e-3)

    print("KERNEL_OK")
</pallas_src>

<mosaic_0001>
module attributes {stable_mosaic.version = 11 : i64} {
  func.func @cam_head_kernel(%arg0: i32, %arg1: memref<2x512x128xbf16, #tpu.memory_space<vmem>>, %arg2: memref<20x512xbf16, #tpu.memory_space<vmem>>, %arg3: memref<128x128xf32, #tpu.memory_space<vmem>>, %arg4: memref<20x128xf32, #tpu.memory_space<vmem>>) attributes {dimension_semantics = [#tpu.dimension_semantics<parallel>], iteration_bounds = array<i64: 2>, scalar_prefetch = 0 : i64, scratch_operands = 0 : i64, tpu.core_type = #tpu.core_type<tc>, window_params = [{transform_indices = @transform_0, window_bounds = array<i64: 2, 512, 128>}, {pipeline_mode = #tpu.pipeline_mode<synchronous>, transform_indices = @transform_1, window_bounds = array<i64: 20, 512>}, {pipeline_mode = #tpu.pipeline_mode<synchronous>, transform_indices = @transform_2, window_bounds = array<i64: 128, 128>}, {transform_indices = @transform_3, window_bounds = array<i64: 20, 128>}]} {
    %c0 = arith.constant 0 : index
    %c0_0 = arith.constant 0 : index
    %0 = vector.load %arg2[%c0, %c0_0] : memref<20x512xbf16, #tpu.memory_space<vmem>>, vector<20x512xbf16>
    %c0_1 = arith.constant 0 : index
    %c0_2 = arith.constant 0 : index
    %c0_3 = arith.constant 0 : index
    %1 = vector.load %arg1[%c0_1, %c0_2, %c0_3] : memref<2x512x128xbf16, #tpu.memory_space<vmem>>, vector<1x512x128xbf16>
    %2 = vector.shape_cast %1 : vector<1x512x128xbf16> to vector<512x128xbf16>
    %cst = arith.constant dense<0.000000e+00> : vector<20x128xf32>
    %3 = tpu.matmul %0, %2, %cst {dimension_numbers = #tpu.dot_dimension_numbers<[1], [0], [0], [1], [0, 0, 1, 1], [], []>} : vector<20x512xbf16>, vector<512x128xbf16>, vector<20x128xf32> -> vector<20x128xf32>
    %cst_4 = arith.constant 0.000000e+00 : f32
    %4 = vector.broadcast %cst_4 : f32 to vector<20x128xf32>
    %5 = arith.maximumf %3, %4 : vector<20x128xf32>
    %c1 = arith.constant 1 : index
    %c0_5 = arith.constant 0 : index
    %c0_6 = arith.constant 0 : index
    %6 = vector.load %arg1[%c1, %c0_5, %c0_6] : memref<2x512x128xbf16, #tpu.memory_space<vmem>>, vector<1x512x128xbf16>
    %7 = vector.shape_cast %6 : vector<1x512x128xbf16> to vector<512x128xbf16>
    %cst_7 = arith.constant dense<0.000000e+00> : vector<20x128xf32>
    %8 = tpu.matmul %0, %7, %cst_7 {dimension_numbers = #tpu.dot_dimension_numbers<[1], [0], [0], [1], [0, 0, 1, 1], [], []>} : vector<20x512xbf16>, vector<512x128xbf16>, vector<20x128xf32> -> vector<20x128xf32>
    %cst_8 = arith.constant 0.000000e+00 : f32
    %9 = vector.broadcast %cst_8 : f32 to vector<20x128xf32>
    %10 = arith.maximumf %8, %9 : vector<20x128xf32>
    %c0_9 = arith.constant 0 : index
    %c0_10 = arith.constant 0 : index
    %11 = vector.load %arg3[%c0_9, %c0_10] : memref<128x128xf32, #tpu.memory_space<vmem>>, vector<128x128xf32>
    %cst_11 = arith.constant dense<0.000000e+00> : vector<20x128xf32>
    %12 = tpu.matmul %10, %11, %cst_11 {dimension_numbers = #tpu.dot_dimension_numbers<[1], [0], [0], [1], [0, 0, 1, 1], [], []>} : vector<20x128xf32>, vector<128x128xf32>, vector<20x128xf32> -> vector<20x128xf32>
    %13 = arith.addf %5, %12 : vector<20x128xf32>
    %c0_12 = arith.constant 0 : index
    %c0_13 = arith.constant 0 : index
    %14 = vector.load %arg4[%c0_12, %c0_13] : memref<20x128xf32, #tpu.memory_space<vmem>>, vector<20x128xf32>
    tpu.vector_store %arg4[%c0_12, %c0_13], %13 {strides = array<i32>} : memref<20x128xf32, #tpu.memory_space<vmem>>, vector<20x128xf32>,
    return
  }
  func.func @transform_0(%arg0: i32) -> (i32, i32, i32) {
    %c0_i32 = arith.constant 0 : i32
    %c0_i32_0 = arith.constant 0 : i32
    %c0_i32_1 = arith.constant 0 : i32
    return %c0_i32, %c0_i32_0, %arg0 : i32, i32, i32
  }
  func.func @transform_1(%arg0: i32) -> (i32, i32) {
    %c0_i32 = arith.constant 0 : i32
    %c0_i32_0 = arith.constant 0 : i32
    %c0_i32_1 = arith.constant 0 : i32
    return %c0_i32, %c0_i32_0 : i32, i32
  }
  func.func @transform_2(%arg0: i32) -> (i32, i32) {
    %c0_i32 = arith.constant 0 : i32
    %c0_i32_0 = arith.constant 0 : i32
    %c0_i32_1 = arith.constant 0 : i32
    return %c0_i32, %c0_i32_0 : i32, i32
  }
  func.func @transform_3(%arg0: i32) -> (i32, i32) {
    %c0_i32 = arith.constant 0 : i32
    %c0_i32_0 = arith.constant 0 : i32
    return %c0_i32, %arg0 : i32, i32
  }
}

</mosaic_0001>

<bundles_post_ra>
// kernel: tpu_custom_call.1
= control target key start
LH: loop header
LB: loop body
LE: loop exit
PB: predicated region body
PF: predicated region fallthrough
CT: control target
= control target key end

     0   :  { %8 = vsyncpa [#allocation3], 0  ;;  %s2182_s0 = inlined_call_operand.hbm [shape: bf16[2,512,256], index: 0, kind: input, shape index: {}]   ;;  %s2183_s1 = inlined_call_operand.hbm [shape: bf16[20,512], index: 1, kind: input, shape index: {}]   ;;  %s2184_s2 = inlined_call_operand.hbm [shape: f32[128,128], index: 2, kind: input, shape index: {}]   ;;  %s2185_s3 = inlined_call_operand.hbm [shape: f32[20,256], index: 3, kind: output, shape index: {}]  }
   0x1   :  { %10 = vsyncpa [#allocation3 + $0x1], 0 }
   0x2   :  { %11 = vsyncpa [#allocation6], 0 }
   0x3   :  { %12 = vsyncpa [#allocation4], 0 }
   0x4   :  { %14 = vsyncpa [#allocation4 + $0x1], 0  ;;  %s1868_s12 = smov 0   ;;  %s1870_s13 = smov 0  }
   0x5   :  { %s1872_s14 = smov 0   ;;  %s1874_s15 = smov 0  }
   0x6 LB: > { %s1889_s16 = sadd.s32 4294967295, %s1831_s15   ;;  %s1176_s17 = sadd.s32 4294967294, %s1831_s15   ;;  %s1831_s15 = sphi %s1874_s15, %s2207_s15   ;;  %s1827_s14 = sphi %s1872_s14, %s2206_s14   ;;  %s1823_s13 = sphi %s1870_s13, %s2205_s13   ;;  %s1819_s12 = sphi %s1868_s12, %s2204_s12  }
   0x7   : > { %s1893_s18 = sadd.s32 1, %s1831_s15   ;;  %s27_s19 = sadd.s32 1, %s1827_s14 }
   0x8   : > { %s24_s20 = ssub.s32 %s1831_s15, %s1893_s18  ;;  %p34_p0 = scmp.ne.s32.totalorder %s1827_s14, %s1823_s13 }
   0x9   : > { %p25_p1 = scmp.eq.s32.totalorder %s24_s20, 0  ;;  %p35_p2 = scmp.eq.s32.totalorder %s1831_s15, 0 }
   0xa   : > { %p40_p3 = scmp.ne.s32.totalorder %s1823_s13, %s1819_s12  ;;  %p2187_p4 = scmp.eq.s32.totalorder %s1889_s16, 0 }
   0xb   : > { %s1905_s21 = scalar_select %p25_p1, %s1827_s14, %s27_s19  }
   0xc   : > { %p1907_p5 = por %p35_p2, %p34_p0  ;;  %p1913_p6 = por %p2187_p4, %p40_p3 }
   0xd   : > { %p106_p7 = scmp.eq.s32.totalorder %s1889_s16, 1  ;;  %p112_p8 = scmp.eq.s32.totalorder %s1176_s17, 1 }
   0xe   : > { %s2191_s23 = scalar_select %p1913_p6, 1, 0 }
   0xf   : > { %p1177_p9 = scmp.ge.s32.totalorder %s1831_s15, 1  ;;  %p119_p10 = scmp.lt.s32.totalorder %s1831_s15, 3 }
  0x10   : > { %p1920_p11 = por %p106_p7, %p34_p0  ;;  %p1924_p12 = por %p112_p8, %p40_p3 }
  0x11   : > { %p1928_p13 = pnand %p1177_p9, %p119_p10  ;;  %s1833_s27 = smov [#allocation5]  }
  0x12   : > { %s2192_s24 = scalar_select %p1920_p11, 1, 0 }
  0x13   : > { %s2193_s25 = scalar_select %p1924_p12, 1, 0 }
  0x14   : > { %s2194_s26 = scalar_select %p1928_p13, 1, 0 }
  0x15   : > { %p1543_p1 = pneg %p1928_p13  ;;  %s131_s28 = sshll.u32 %s1833_s27, 4  ;;  %s132_s28 = int_to_ptr.vmem [resolvable:$true] %s131_s28 }
  0x16   : > { %p1560_p3 = scmp.lt.s32.totalorder %s1831_s15, 2  ;;  %s1834_s30 = smov [#allocation7]  }
  0x17   : > { %p1936_p2 = pnand %p1543_p1, %p2187_p4  ;;  %s144_s4 = sshll.u32 %s1834_s30, 4  ;;  %s145_s4 = int_to_ptr.vmem [resolvable:$true] %s144_s4 }
  0x18   : > { %s1694_s5 = scalar_lea.vmem %s132_s28, 768  ;;  %p1702_p12 = scmp.lt.s32.totalorder %s132_s28, %s132_s28 }
  0x19   : > { %p1685_p7 = pneg %p1936_p2  ;;  %p1695_p8 = scmp.ne.s32.totalorder %s132_s28, %s1694_s5 }
  0x1a   : > { %p1703_p11 = scmp.lt.s32.totalorder %s1694_s5, %s1694_s5 }
  0x1b   : > { %p1697_p9 = pnand %p1695_p8, %p1685_p7 }
  0x1c   : > { %p1704_p1 = por %p1703_p11, %p1702_p12 }
  0x1d   : > { %p1698_p10 = pneg %p1697_p9 }
  0x1f   : > { %p1705_p4 = pnand %p1704_p1, %p1698_p10 }
  0x21   : > { %1708 = shalt.err (!%p1705_p4)
}
  0x22   : > { %s1835_s6 = smov 256   ;;  %s1836_s7 = smov 16  }
  0x23   : > { %1546 = dma.hbm_to_vmem [thread:$0]  (!%p1936_p2), %s2183_s1, 768, %s132_s28, [#allocation6], %s1835_s6, %s1835_s6, %s1836_s7  }
  0x24   : > { %p1956_p8 = pnand %p1560_p3, %p1907_p5  ;;  %s158_s11 = sand.u32 1, %s1827_s14  }
  0x25   : > { %s1720_s17 = scalar_lea.vmem %s145_s4, 2048  ;;  %p1728_p9 = scmp.lt.s32.totalorder %s145_s4, %s145_s4 }
  0x26   : > { %p1721_p4 = scmp.ne.s32.totalorder %s145_s4, %s1720_s17  ;;  %p1729_p10 = scmp.lt.s32.totalorder %s1720_s17, %s1720_s17 }
  0x28   : > { %p1723_p11 = pnand %p1721_p4, %p1685_p7  ;;  %p1730_p1 = por %p1729_p10, %p1728_p9 }
  0x2a   : > { %p1724_p12 = pneg %p1723_p11 }
  0x2c   : > { %p1731_p0 = pnand %p1730_p1, %p1724_p12 }
  0x2e   : > { %1734 = shalt.err (!%p1731_p0)
}
  0x2f   : > { %s1837_s19 = smov 128   ;;  %s1838_s20 = smov 8  }
  0x30   : > { %1549 = dma.hbm_to_vmem [thread:$0]  (!%p1936_p2), %s2184_s2, 2048, %s145_s4, [#allocation6], %s1837_s19, %s1837_s19, %s1838_s20  }
  0x31   : > { %s1181_s28 = sshll.u32 %s158_s11, 9  ;;  %s1182_s30 = sshll.u32 %s1831_s15, 6 }
  0x32   : > { %s1975_s7 = scalar_lea.hbm %s2182_s0, %s1182_s30  ;;  %s162_s8 = scalar_lea.vmem [#allocation2], %s1181_s28 }
  0x33   : > { %s168_s9 = sshll.u32 %s162_s8, 4  ;;  %s1979_s29 = scalar_lea.sflag [#allocation3], %s158_s11  ;;  %s1977_s9 = int_to_ptr.vmem [resolvable:$true] %s168_s9 }
  0x34   : > { %s1735_s17 = scalar_lea.hbm %s1975_s7, 8192  ;;  %p1737_p2 = pneg %p1956_p8 }
  0x35   : > { %p1736_p5 = scmp.ne.s32.totalorder %s1975_s7, %s1735_s17  ;;  %s1740_s22 = scalar_lea.hbm %s2182_s0, 16384 }
  0x36   : > { %p1741_p7 = scmp.lt.s32.totalorder %s1975_s7, %s2182_s0  ;;  %p1742_p4 = scmp.lt.s32.totalorder %s1740_s22, %s1735_s17 }
  0x37   : > { %p1738_p0 = pnand %p1737_p2, %p1736_p5 }
  0x38   : > { %p1743_p11 = por %p1742_p4, %p1741_p7 }
  0x39   : > { %p1739_p3 = pneg %p1738_p0 }
  0x3b   : > { %p1744_p12 = pnand %p1743_p11, %p1739_p3 }
  0x3d   : > { %1747 = shalt.err (!%p1744_p12)
}
  0x3e   : > { %s1748_s11 = scalar_lea.vmem %s1977_s9, 8192  ;;  %s1839_s28 = smov [#allocation2]  }
  0x3f   : > { %p1749_p9 = scmp.ne.s32.totalorder %s1977_s9, %s1748_s11  ;;  %s1753_s5 = sshll.u32 %s1839_s28, 4  ;;  %s1754_s5 = int_to_ptr.vmem [resolvable:$false] %s1753_s5 }
  0x40   : > { %s1755_s6 = scalar_lea.vmem %s1754_s5, 16384  ;;  %p1756_p5 = scmp.lt.s32.totalorder %s1977_s9, %s1754_s5 }
  0x41   : > { %p1751_p10 = pnand %p1749_p9, %p1737_p2  ;;  %p1757_p0 = scmp.lt.s32.totalorder %s1755_s6, %s1748_s11 }
  0x43   : > { %p1752_p1 = pneg %p1751_p10  ;;  %p1758_p6 = por %p1757_p0, %p1756_p5 }
  0x45   : > { %p1759_p13 = pnand %p1758_p6, %p1752_p1 }
  0x47   : > { %1762 = shalt.err (!%p1759_p13)
}
  0x48   : > { %s1840_s8 = smov 64   ;;  %s1841_s17 = smov 4  }
  0x49   : > { %1553 = dma.hbm_to_vmem [thread:$0]  (!%p1956_p8), %s1975_s7, 8192, %s1977_s9, %s1979_s29, %s1837_s19, %s1840_s8, %s1841_s17  }
  0x4a   : > { %p2197_p2 = scmp.ne.s32.totalorder %s2194_s26, 0 }
  0x4b   : > { %s2004_s4 = sand.u32 (!%p2197_p2), 1, %s1823_s13   ;;  %p2198_p6 = scmp.ne.s32.totalorder (!%p2197_p2), %s2191_s23, 0 }
  0x4c   : > { %180 = sbr.rel (%p2197_p2) target bundleno = 571 (0x23b), region = 32  ;;  %s1184_s20 = sshll.u32 (!%p2197_p2), %s2004_s4, 9 }
  0x4d   : > { %s183_s22 = scalar_lea.sflag (!%p2197_p2), [#allocation3], %s2004_s4  ;;  %s2008_s27 = scalar_lea.vmem (!%p2197_p2), [#allocation2], %s1184_s20 }
  0x51   : > { %1806 = dma.done.wait (%p2198_p6), %s183_s22, 8192  }
  0x52   : > { %1808 = vsyncadd (%p2198_p6), %s183_s22, 4294959104  ;;  %p2199_p13 = scmp.eq.s32.totalorder %s1889_s16, 0 }
  0x54   : > { %1810 = dma.done.wait (%p2199_p13), [#allocation6], 2816   ;;  %p2200_p8 = pmov %p2199_p13 }
  0x55   : > { %v1609_v0 = vld [vmem:[%s2008_s27 + $0x78] sm:$0xff]   ;;  %v1613_v4 = vld [vmem:[%s2008_s27 + $0x70] sm:$0xff]   ;;  %v1617_v8 = vld [vmem:[%s2008_s27 + $0x68] sm:$0xff]   ;;  %vm1843_vm0 = vmmov 0   ;;  %s1530_s23 = smul.u32 24, %s2004_s4  ;;  %s1323_s19 = sshll.u32 %s1889_s16, 7 }
  0x56   : > { %1812 = vsyncadd (%p2200_p8), [#allocation6], 4294964480  ;;  %v1610_v1 = vld [vmem:[%s2008_s27 + $0xf8] sm:$0xff]   ;;  %1326 = vmatprep.subr.bf16.mxu0 %v1609_v0  ;;  %v1614_v5 = vld [vmem:[%s2008_s27 + $0xf0] sm:$0xff]   ;;  %s2139_s29 = scalar_lea.hbm %s2185_s3, %s1323_s19  ;;  %s1072_s30 = scalar_lea.sflag [#allocation4], %s2004_s4 }
  0x57   : > { %v1611_v2 = vld [vmem:[%s2008_s27 + $0x38] sm:$0xff]   ;;  %1354 = vmatprep.subr.bf16.mxu1 %v1610_v1  ;;  %v1615_v6 = vld [vmem:[%s2008_s27 + $0x30] sm:$0xff]   ;;  %v1618_v9 = vld [vmem:[%s2008_s27 + $0xe8] sm:$0xff]   ;;  %s216_s26 = scalar_lea.vmem [#allocation8], %s1530_s23  ;;  %p2201_p7 = scmp.ne.s32.totalorder %s2192_s24, 0 }
  0x58   : > { %v1612_v3 = vld [vmem:[%s2008_s27 + $0xb8] sm:$0xff]   ;;  %1327 = vmatpush3.bf16.msra.mxu0 %v1611_v2  ;;  %v1616_v7 = vld [vmem:[%s2008_s27 + $0xb0] sm:$0xff]   ;;  %v1619_v10 = vld [vmem:[%s2008_s27 + $0x28] sm:$0xff]   ;;  %s1084_s10 = sshll.u32 %s216_s26, 4  ;;  %s1844_s16 = smov [#allocation8]   ;;  %s2134_s10 = int_to_ptr.vmem [resolvable:$true] %s1084_s10 }
  0x59   : > { %1355 = vmatpush3.bf16.msra.mxu1 %v1612_v3  ;;  %1328 = vmatprep.subr.bf16.mxu0 %v1613_v4  ;;  %v1620_v11 = vld [vmem:[%s2008_s27 + $0xa8] sm:$0xff]   ;;  %v1621_v12 = vld [vmem:[%s2008_s27 + $0x60] sm:$0xff]   ;;  %v1625_v16 = vld [vmem:[%s2008_s27 + $0x58] sm:$0xff]   ;;  %s1763_s11 = scalar_lea.vmem %s2134_s10, 384  ;;  %s1767_s28 = sshll.u32 %s1844_s16, 4  ;;  %s1768_s28 = int_to_ptr.vmem [resolvable:$false] %s1767_s28 }
  0x5a   : > { %1356 = vmatprep.subr.bf16.mxu1 %v1614_v5  ;;  %v1622_v13 = vld [vmem:[%s2008_s27 + $0xe0] sm:$0xff]   ;;  %v1626_v17 = vld [vmem:[%s2008_s27 + $0xd8] sm:$0xff]   ;;  %v1629_v20 = vld [vmem:[%s2008_s27 + $0x50] sm:$0xff]   ;;  %p1764_p3 = scmp.ne.s32.totalorder %s2134_s10, %s1763_s11  ;;  %s1769_s5 = scalar_lea.vmem %s1768_s28, 768 }
  0x5b   : > { %v1623_v14 = vld [vmem:[%s2008_s27 + $0x20] sm:$0xff]   ;;  %v1627_v18 = vld [vmem:[%s2008_s27 + $0x18] sm:$0xff]   ;;  %v1630_v21 = vld [vmem:[%s2008_s27 + $0xd0] sm:$0xff]   ;;  %p1770_p12 = scmp.lt.s32.totalorder %s2134_s10, %s1768_s28  ;;  %p1771_p9 = scmp.lt.s32.totalorder %s1769_s5, %s1763_s11 }
  0x5c   : > { %1329 = vmatpush3.bf16.msra.mxu0 %v1615_v6  ;;  %v1624_v15 = vld [vmem:[%s2008_s27 + $0xa0] sm:$0xff]   ;;  %v1628_v19 = vld [vmem:[%s2008_s27 + $0x98] sm:$0xff]   ;;  %v1631_v22 = vld [vmem:[%s2008_s27 + $0x10] sm:$0xff]   ;;  %p1765_p4 = pnand %p1764_p3, %p2201_p7 }
  0x5d   : > { %1357 = vmatpush3.bf16.msra.mxu1 %v1616_v7  ;;  %1330 = vmatprep.subr.bf16.mxu0 %v1617_v8  ;;  %v1632_v23 = vld [vmem:[%s2008_s27 + $0x90] sm:$0xff]   ;;  %v1633_v24 = vld [vmem:[%s2008_s27 + $0x48] sm:$0xff]   ;;  %v1637_v28 = vld [vmem:[%s2008_s27 + $0x40] sm:$0xff]   ;;  %p1772_p10 = por %p1771_p9, %p1770_p12 }
  0x5e   : > { %1358 = vmatprep.subr.bf16.mxu1 %v1618_v9  ;;  %v1634_v25 = vld [vmem:[%s2008_s27 + $0xc8] sm:$0xff]   ;;  %v1638_v29 = vld [vmem:[%s2008_s27 + $0xc0] sm:$0xff]   ;;  %v1647_v36 = vld [vmem:[%s2008_s27 + $0x178] sm:$0xff]   ;;  %p1766_p11 = pneg %p1765_p4 }
  0x5f   : > { %v1635_v26 = vld [vmem:[%s2008_s27 + $0x8] sm:$0xff]   ;;  %v1639_v30 = vld [vmem:[%s2008_s27] sm:$0xff]   ;;  %v1648_v37 = vld [vmem:[%s2008_s27 + $0x1f8] sm:$0xff]  }
  0x60   : > { %1331 = vmatpush3.bf16.msra.mxu0 %v1619_v10  ;;  %v1636_v27 = vld [vmem:[%s2008_s27 + $0x88] sm:$0xff]   ;;  %v1640_v31 = vld [vmem:[%s2008_s27 + $0x80] sm:$0xff]   ;;  %v1649_v38 = vld [vmem:[%s2008_s27 + $0x138] sm:$0xff]   ;;  %p1773_p1 = pnand %p1772_p10, %p1766_p11 }
  0x61   : > { %1359 = vmatpush3.bf16.msra.mxu1 %v1620_v11  ;;  %1332 = vmatprep.subr.bf16.mxu0 %v1621_v12  ;;  %v2050_v32 = vld [vmem:[#allocation5] ss:$16 sps:$4 sm:$0xff]   ;;  %v1643_v33 = vld [vmem:[#allocation5 + $0x4] ss:$16 sps:$4 sm:$0xff]   ;;  %v2052_v34 = vld [vmem:[#allocation5 + $0x8] ss:$16 sps:$4 sm:$0xff]  }
  0x62   : > { %1360 = vmatprep.subr.bf16.mxu1 %v1622_v13  ;;  %v2054_v35 = vld [vmem:[#allocation5 + $0xc] ss:$16 sps:$4 sm:$0xff]   ;;  %546 = vmatprep.mubr.bf16.mxu0 %v1643_v33  ;;  %v1651_v40 = vld [vmem:[%s2008_s27 + $0x170] sm:$0xff]   ;;  %v1659_v48 = vld [vmem:[%s2008_s27 + $0x160] sm:$0xff]   ;;  %v1842_v11 = vmov 0.0  }
  0x63   : > { %594 = vmatprep.mubr.bf16.mxu1 %v2054_v35  ;;  %v1650_v39 = vld [vmem:[%s2008_s27 + $0x1b8] sm:$0xff]   ;;  %v1652_v41 = vld [vmem:[%s2008_s27 + $0x1f0] sm:$0xff]   ;;  %v1655_v44 = vld [vmem:[%s2008_s27 + $0x168] sm:$0xff]  }
  0x64   : > { %1333 = vmatpush3.bf16.msra.mxu0 %v1623_v14  ;;  %v1653_v42 = vld [vmem:[%s2008_s27 + $0x130] sm:$0xff]   ;;  %v1656_v45 = vld [vmem:[%s2008_s27 + $0x1e8] sm:$0xff]   ;;  %v1660_v49 = vld [vmem:[%s2008_s27 + $0x1e0] sm:$0xff]  }
  0x65   : > { %1361 = vmatpush3.bf16.msra.mxu1 %v1624_v15  ;;  %1334 = vmatprep.subr.bf16.mxu0 %v1625_v16  ;;  %v1654_v43 = vld [vmem:[%s2008_s27 + $0x1b0] sm:$0xff]   ;;  %v1657_v46 = vld [vmem:[%s2008_s27 + $0x128] sm:$0xff]   ;;  %v1661_v50 = vld [vmem:[%s2008_s27 + $0x120] sm:$0xff]  }
  0x66   : > { %1362 = vmatprep.subr.bf16.mxu1 %v1626_v17  ;;  %v1658_v47 = vld [vmem:[%s2008_s27 + $0x1a8] sm:$0xff]   ;;  %v1662_v51 = vld [vmem:[%s2008_s27 + $0x1a0] sm:$0xff]   ;;  %v1663_v52 = vld [vmem:[%s2008_s27 + $0x158] sm:$0xff]  }
  0x67   : > { %v1664_v53 = vld [vmem:[%s2008_s27 + $0x1d8] sm:$0xff]   ;;  %v222_v54 = vld [vmem:[#allocation5 + $0x20] sm:$0x33]  ;;  %v223_v56 = vld [vmem:[#allocation5 + $0x28] sm:$0x33] }
  0x68   : > { %1335 = vmatpush3.bf16.msra.mxu0 %v1627_v18  ;;  %v1192_v55 = vcombine.high %v222_v54, %v222_v54  ;;  %v1191_v57 = vcombine.low %v222_v54, %v222_v54  ;;  %v1194_v58 = vcombine.high %v223_v56, %v223_v56  ;;  %v1667_v59 = vld [vmem:[%s2008_s27 + $0x118] sm:$0xff]   ;;  %v1193_v60 = vcombine.low %v223_v56, %v223_v56  ;;  %v1671_v62 = vld [vmem:[%s2008_s27 + $0x150] sm:$0xff]   ;;  %v1675_v2 = vld [vmem:[%s2008_s27 + $0x148] sm:$0xff]  }
  0x69   : > { %1363 = vmatpush3.bf16.msra.mxu1 %v1628_v19  ;;  %1336 = vmatprep.subr.bf16.mxu0 %v1629_v20  ;;  %v1668_v61 = vld [vmem:[%s2008_s27 + $0x198] sm:$0xff]   ;;  %v1672_v63 = vld [vmem:[%s2008_s27 + $0x1d0] sm:$0xff]   ;;  %v1676_v3 = vld [vmem:[%s2008_s27 + $0x1c8] sm:$0xff]  }
  0x6a   : > { %1364 = vmatprep.subr.bf16.mxu1 %v1630_v21  ;;  %v1673_v0 = vld [vmem:[%s2008_s27 + $0x110] sm:$0xff]   ;;  %v1677_v4 = vld [vmem:[%s2008_s27 + $0x108] sm:$0xff]   ;;  %v1679_v6 = vld [vmem:[%s2008_s27 + $0x140] sm:$0xff]  }
  0x6b   : > { %v1674_v1 = vld [vmem:[%s2008_s27 + $0x190] sm:$0xff]   ;;  %v1678_v5 = vld [vmem:[%s2008_s27 + $0x188] sm:$0xff]   ;;  %v1680_v7 = vld [vmem:[%s2008_s27 + $0x1c0] sm:$0xff]  }
  0x6c   : > { %1337 = vmatpush3.bf16.msra.mxu0 %v1631_v22  ;;  %v1681_v8 = vld [vmem:[%s2008_s27 + $0x100] sm:$0xff]   ;;  %v984_v10 = vld [vmem:[#allocation7 + $0x78] sm:$0xff]  ;;  %v982_v13 = vld [vmem:[#allocation7 + $0x68] sm:$0xff] }
  0x6d   : > { %1365 = vmatpush3.bf16.msra.mxu1 %v1632_v23  ;;  %1338 = vmatprep.subr.bf16.mxu0 %v1633_v24  ;;  %v1682_v9 = vld [vmem:[%s2008_s27 + $0x180] sm:$0xff]   ;;  %v981_v14 = vld [vmem:[#allocation7 + $0x60] sm:$0xff]  ;;  %v980_v15 = vld [vmem:[#allocation7 + $0x58] sm:$0xff] }
  0x6e   : > { %1366 = vmatprep.subr.bf16.mxu1 %v1634_v25  ;;  %v983_v12 = vld [vmem:[#allocation7 + $0x70] sm:$0xff]  ;;  %v978_v17 = vld [vmem:[#allocation7 + $0x48] sm:$0xff]  ;;  %v977_v18 = vld [vmem:[#allocation7 + $0x40] sm:$0xff] }
  0x6f   : > { %v979_v16 = vld [vmem:[#allocation7 + $0x50] sm:$0xff]  ;;  %v976_v19 = vld [vmem:[#allocation7 + $0x38] sm:$0xff]  ;;  %v974_v21 = vld [vmem:[#allocation7 + $0x28] sm:$0xff] }
  0x70   : > { %1339 = vmatpush3.bf16.msra.mxu0 %v1635_v26  ;;  %v975_v20 = vld [vmem:[#allocation7 + $0x30] sm:$0xff]  ;;  %v973_v22 = vld [vmem:[#allocation7 + $0x20] sm:$0xff]  ;;  %v972_v23 = vld [vmem:[#allocation7 + $0x18] sm:$0xff] }
  0x71   : > { %1367 = vmatpush3.bf16.msra.mxu1 %v1636_v27  ;;  %1340 = vmatprep.subr.bf16.mxu0 %v1637_v28  ;;  %v971_v24 = vld [vmem:[#allocation7 + $0x10] sm:$0xff]  ;;  %v970_v25 = vld [vmem:[#allocation7 + $0x8] sm:$0xff]  ;;  %v969_v26 = vld [vmem:[#allocation7] sm:$0xff] }
  0x72   : > { %1368 = vmatprep.subr.bf16.mxu1 %v1638_v29 }
  0x74   : > { %1341 = vmatpush3.bf16.msra.mxu0 %v1639_v30 }
  0x75   : > { %1369 = vmatpush3.bf16.msra.mxu1 %v1640_v31  ;;  %1382 = vmatprep.subr.bf16.mxu0 %v1647_v36 }
  0x76   : > { %1410 = vmatprep.subr.bf16.mxu1 %v1648_v37 }
  0x77   : > { %547 = vmatmul.mubr.bf16.vlgmr.msra.gmra.mxu0 %v2050_v32 }
  0x78   : > { %595 = vmatmul.mubr.bf16.vlgmr.msra.gmra.mxu1 %v2052_v34  ;;  %1383 = vmatpush3.bf16.msra.mxu0 %v1649_v38 }
  0x79   : > { %1411 = vmatpush3.bf16.msra.mxu1 %v1650_v39  ;;  %1384 = vmatprep.subr.bf16.mxu0 %v1651_v40 }
  0x7a   : > { %1412 = vmatprep.subr.bf16.mxu1 %v1652_v41  ;;  %554 = vmatprep.mubr.bf16.mxu0 %v1192_v55 }
  0x7b   : > { %602 = vmatprep.mubr.bf16.mxu1 %v1194_v58 }
  0x7c   : > { %1385 = vmatpush3.bf16.msra.mxu0 %v1653_v42 }
  0x7d   : > { %1413 = vmatpush3.bf16.msra.mxu1 %v1654_v43  ;;  %1386 = vmatprep.subr.bf16.mxu0 %v1655_v44 }
  0x7e   : > { %1414 = vmatprep.subr.bf16.mxu1 %v1656_v45 }
  0x7f   : > { %555 = vmatmul.mubr.bf16.gmra.mxu0 %v1191_v57 }
  0x80   : > { %1387 = vmatpush3.bf16.msra.mxu0 %v1657_v46  ;;  %603 = vmatmul.mubr.bf16.gmra.mxu1 %v1193_v60 }
  0x81   : > { %1415 = vmatpush3.bf16.msra.mxu1 %v1658_v47  ;;  %1388 = vmatprep.subr.bf16.mxu0 %v1659_v48 }
  0x82   : > { %1416 = vmatprep.subr.bf16.mxu1 %v1660_v49  ;;  %902 = vmatprep.mubr.bf16.mxu0 %v1643_v33 }
  0x83   : > { %950 = vmatprep.mubr.bf16.mxu1 %v2054_v35 }
  0x84   : > { %1389 = vmatpush3.bf16.msra.mxu0 %v1661_v50 }
  0x85   : > { %1417 = vmatpush3.bf16.msra.mxu1 %v1662_v51  ;;  %1390 = vmatprep.subr.bf16.mxu0 %v1663_v52 }
  0x86   : > { %1418 = vmatprep.subr.bf16.mxu1 %v1664_v53 }
  0x88   : > { %1391 = vmatpush3.bf16.msra.mxu0 %v1667_v59 }
  0x89   : > { %1419 = vmatpush3.bf16.msra.mxu1 %v1668_v61  ;;  %1392 = vmatprep.subr.bf16.mxu0 %v1671_v62 }
  0x8a   : > { %1420 = vmatprep.subr.bf16.mxu1 %v1672_v63 }
  0x8c   : > { %1393 = vmatpush3.bf16.msra.mxu0 %v1673_v0 }
  0x8d   : > { %1421 = vmatpush3.bf16.msra.mxu1 %v1674_v1  ;;  %1394 = vmatprep.subr.bf16.mxu0 %v1675_v2 }
  0x8e   : > { %1422 = vmatprep.subr.bf16.mxu1 %v1676_v3 }
  0x90   : > { %1395 = vmatpush3.bf16.msra.mxu0 %v1677_v4 }
  0x91   : > { %1423 = vmatpush3.bf16.msra.mxu1 %v1678_v5  ;;  %1396 = vmatprep.subr.bf16.mxu0 %v1679_v6 }
  0x92   : > { %1424 = vmatprep.subr.bf16.mxu1 %v1680_v7 }
  0x94   : > { %1397 = vmatpush3.bf16.msra.mxu0 %v1681_v8 }
  0x95   : > { %1425 = vmatpush3.bf16.msra.mxu1 %v1682_v9  ;;  %1457 = vmatprep.subr.mxu0 %v1842_v11 }
  0x96   : > { %1498 = vmatprep.subr.mxu1 %v1842_v11 }
  0x97   : > { %903 = vmatmul.mubr.bf16.vlgmr.msra.gmra.mxu0 %v2050_v32 }
  0x98   : > { %951 = vmatmul.mubr.bf16.vlgmr.msra.gmra.mxu1 %v2052_v34  ;;  %910 = vmatprep.mubr.bf16.mxu0 %v1192_v55 }
  0x99   : > { %958 = vmatprep.mubr.bf16.mxu1 %v1194_v58  ;;  %1458 = vmatpush3.msra.mxu0 %v984_v10 }
  0x9a   : > { %1514 = vmatpush3.msra.mxu1 %v984_v10  ;;  %1459 = vmatprep.subr.mxu0 %v1842_v11 }
  0x9b   : > { %1499 = vmatprep.subr.mxu1 %v1842_v11  ;;  %1460 = vmatpush3.msra.mxu0 %v983_v12 }
  0x9c   : > { %1515 = vmatpush3.msra.mxu1 %v983_v12  ;;  %1461 = vmatprep.subr.mxu0 %v1842_v11 }
  0x9d   : > { %1500 = vmatprep.subr.mxu1 %v1842_v11  ;;  %1462 = vmatpush3.msra.mxu0 %v982_v13 }
  0x9e   : > { %1516 = vmatpush3.msra.mxu1 %v982_v13  ;;  %1463 = vmatprep.subr.mxu0 %v1842_v11 }
  0x9f   : > { %911 = vmatmul.mubr.bf16.gmra.mxu0 %v1191_v57  ;;  %1501 = vmatprep.subr.mxu1 %v1842_v11 }
  0xa0   : > { %959 = vmatmul.mubr.bf16.gmra.mxu1 %v1193_v60  ;;  %1464 = vmatpush3.msra.mxu0 %v981_v14 }
  0xa1   : > { %1517 = vmatpush3.msra.mxu1 %v981_v14  ;;  %1465 = vmatprep.subr.mxu0 %v1842_v11 }
  0xa2   : > { %1502 = vmatprep.subr.mxu1 %v1842_v11  ;;  %1466 = vmatpush3.msra.mxu0 %v980_v15 }
  0xa3   : > { %1518 = vmatpush3.msra.mxu1 %v980_v15  ;;  %1467 = vmatprep.subr.mxu0 %v1842_v11 }
  0xa4   : > { %1503 = vmatprep.subr.mxu1 %v1842_v11  ;;  %1468 = vmatpush3.msra.mxu0 %v979_v16 }
  0xa5   : > { %1519 = vmatpush3.msra.mxu1 %v979_v16  ;;  %1469 = vmatprep.subr.mxu0 %v1842_v11 }
  0xa6   : > { %1504 = vmatprep.subr.mxu1 %v1842_v11  ;;  %1470 = vmatpush3.msra.mxu0 %v978_v17 }
  0xa7   : > { %1520 = vmatpush3.msra.mxu1 %v978_v17  ;;  %1471 = vmatprep.subr.mxu0 %v1842_v11 }
  0xa8   : > { %1505 = vmatprep.subr.mxu1 %v1842_v11  ;;  %1472 = vmatpush3.msra.mxu0 %v977_v18 }
  0xa9   : > { %1521 = vmatpush3.msra.mxu1 %v977_v18  ;;  %1473 = vmatprep.subr.mxu0 %v1842_v11 }
  0xaa   : > { %1506 = vmatprep.subr.mxu1 %v1842_v11  ;;  %1474 = vmatpush3.msra.mxu0 %v976_v19 }
  0xab   : > { %1522 = vmatpush3.msra.mxu1 %v976_v19  ;;  %1475 = vmatprep.subr.mxu0 %v1842_v11 }
  0xac   : > { %1507 = vmatprep.subr.mxu1 %v1842_v11  ;;  %1476 = vmatpush3.msra.mxu0 %v975_v20 }
  0xad   : > { %1523 = vmatpush3.msra.mxu1 %v975_v20  ;;  %1477 = vmatprep.subr.mxu0 %v1842_v11 }
  0xae   : > { %1508 = vmatprep.subr.mxu1 %v1842_v11  ;;  %1478 = vmatpush3.msra.mxu0 %v974_v21 }
  0xaf   : > { %1524 = vmatpush3.msra.mxu1 %v974_v21  ;;  %1479 = vmatprep.subr.mxu0 %v1842_v11 }
  0xb0   : > { %1509 = vmatprep.subr.mxu1 %v1842_v11  ;;  %1480 = vmatpush3.msra.mxu0 %v973_v22 }
  0xb1   : > { %1525 = vmatpush3.msra.mxu1 %v973_v22  ;;  %1481 = vmatprep.subr.mxu0 %v1842_v11 }
  0xb2   : > { %1510 = vmatprep.subr.mxu1 %v1842_v11  ;;  %1482 = vmatpush3.msra.mxu0 %v972_v23 }
  0xb3   : > { %1526 = vmatpush3.msra.mxu1 %v972_v23  ;;  %1483 = vmatprep.subr.mxu0 %v1842_v11 }
  0xb4   : > { %1511 = vmatprep.subr.mxu1 %v1842_v11  ;;  %1484 = vmatpush3.msra.mxu0 %v971_v24 }
  0xb5   : > { %1527 = vmatpush3.msra.mxu1 %v971_v24  ;;  %1485 = vmatprep.subr.mxu0 %v1842_v11 }
  0xb6   : > { %1512 = vmatprep.subr.mxu1 %v1842_v11  ;;  %1486 = vmatpush3.msra.mxu0 %v970_v25 }
  0xb7   : > { %1528 = vmatpush3.msra.mxu1 %v970_v25  ;;  %1487 = vmatprep.subr.mxu0 %v1842_v11 }
  0xb8   : > { %1513 = vmatprep.subr.mxu1 %v1842_v11  ;;  %1488 = vmatpush3.msra.mxu0 %v969_v26 }
  0xb9   : > { %1489 = vmatprep.mubr.msk.f32.mxu0 %vm1843_vm0, %v1842_v11  ;;  %1529 = vmatpush3.msra.mxu1 %v969_v26 }
  0xba   : > { %1492 = vmatprep.mubr.msk.f32.mxu1 %vm1843_vm0, %v1842_v11 }
 0x137   : > { %v1342_v27 = vpop.f32.mrf.mxu0 }
 0x138   : > { %v1370_v28 = vpop.f32.mrf.mxu1 }
 0x139   : > { %v1343_v29 = vpop.f32.mrf.mxu0 }
 0x13a   : > { %v1344_v30 = vadd.f32 %v1343_v29, %v1342_v27  ;;  %v1371_v31 = vpop.f32.mrf.mxu1 }
 0x13b   : > { %v1372_v32 = vadd.f32 %v1371_v31, %v1370_v28  ;;  %v1345_v33 = vpop.f32.mrf.mxu0 }
 0x13c   : > { %v1373_v34 = vpop.f32.mrf.mxu1 }
 0x13d   : > { %v597_v35 = vadd.f32 %v1372_v32, %v1344_v30  ;;  %v1346_v36 = vpop.f32.mrf.mxu0 }
 0x13e   : > { %v1347_v37 = vadd.f32 %v1346_v36, %v1345_v33  ;;  %v1374_v38 = vpop.f32.mrf.mxu1 }
 0x13f   : > { %v1375_v39 = vadd.f32 %v1374_v38, %v1373_v34  ;;  %v1348_v41 = vpop.f32.mrf.mxu0  ;;  %v610_v17 = vmax.f32 %v597_v35, 0.0 }
 0x140   : > { %v1376_v42 = vpop.f32.mrf.mxu1 }
 0x141   : > { %v600_v40 = vadd.f32 %v1375_v39, %v1347_v37  ;;  %v1349_v43 = vpop.f32.mrf.mxu0 }
 0x142   : > { %v1350_v44 = vadd.f32 %v1349_v43, %v1348_v41  ;;  %v1377_v45 = vpop.f32.mrf.mxu1 }
 0x143   : > { %v1378_v46 = vadd.f32 %v1377_v45, %v1376_v42  ;;  %v1351_v47 = vpop.f32.mrf.mxu0  ;;  %v611_v21 = vmax.f32 %v600_v40, 0.0 }
 0x144   : > { %v1379_v48 = vpop.f32.mrf.mxu1 }
 0x145   : > { %v605_v49 = vadd.f32 %v1378_v46, %v1350_v44  ;;  %v1352_v50 = vpop.f32.mrf.mxu0 }
 0x146   : > { %v1380_v51 = vpop.f32.mrf.mxu1 }
 0x157   : > { %v1398_v52 = vpop.f32.mrf.mxu0 }
 0x158   : > { %v1426_v53 = vpop.f32.mrf.mxu1 }
 0x159   : > { %v1399_v54 = vpop.f32.mrf.mxu0 }
 0x15a   : > { %v1400_v55 = vadd.f32 %v1399_v54, %v1398_v52  ;;  %v1427_v56 = vpop.f32.mrf.mxu1 }
 0x15b   : > { %v1428_v57 = vadd.f32 %v1427_v56, %v1426_v53  ;;  %v1401_v58 = vpop.f32.mrf.mxu0 }
 0x15c   : > { %v1429_v59 = vpop.f32.mrf.mxu1 }
 0x15d   : > { %v953_v60 = vadd.f32 %v1428_v57, %v1400_v55  ;;  %v1402_v61 = vpop.f32.mrf.mxu0 }
 0x15e   : > { %v1403_v62 = vadd.f32 %v1402_v61, %v1401_v58  ;;  %v1430_v63 = vpop.f32.mrf.mxu1 }
 0x15f   : > { %v966_v0 = vmax.f32 %v953_v60, 0.0  ;;  %v1431_v1 = vadd.f32 %v1430_v63, %v1429_v59  ;;  %v1404_v2 = vpop.f32.mrf.mxu0 }
 0x160   : > { %v1432_v3 = vpop.f32.mrf.mxu1 }
 0x161   : > { %v956_v4 = vadd.f32 %v1431_v1, %v1403_v62  ;;  %1490 = vmatmul.mubr.f32.vlgmr.msra.gmra.mxu0 %v966_v0  ;;  %v1405_v5 = vpop.f32.mrf.mxu0 }
 0x162   : > { %v1406_v6 = vadd.f32 %v1405_v5, %v1404_v2  ;;  %v1433_v7 = vpop.f32.mrf.mxu1 }
 0x163   : > { %v967_v8 = vmax.f32 %v956_v4, 0.0  ;;  %v1434_v9 = vadd.f32 %v1433_v7, %v1432_v3  ;;  %v1407_v10 = vpop.f32.mrf.mxu0 }
 0x164   : > { %v1435_v12 = vpop.f32.mrf.mxu1 }
 0x165   : > { %v961_v13 = vadd.f32 %v1434_v9, %v1406_v6  ;;  %1493 = vmatmul.mubr.f32.vlgmr.msra.gmra.mxu1 %v967_v8  ;;  %v1408_v14 = vpop.f32.mrf.mxu0 }
 0x166   : > { %v1436_v15 = vpop.f32.mrf.mxu1  ;;  %1495 = vmatprep.mubr.msk.f32.mxu1 %vm1843_vm0, %v1842_v11  ;;  %v612_v11 = vmax.f32 %v605_v49, 0.0 }
 0x167   : > { %v968_v16 = vmax.f32 %v961_v13, 0.0 }
 0x169   : > { %1496 = vmatmul.mubr.f32.gmra.mxu1 %v968_v16 }
 0x221   : > { %v1051_v18 = vpop.f32.mrf.mxu0 }
 0x222   : > { %v1065_v19 = vadd.f32 %v1051_v18, %v610_v17 }
 0x223   : > { %v1491_v20 = vpop.f32.mrf.mxu0 }
 0x224   : > { %1068 = vst [vmem:[%s216_s26] sm:$0xff] %v1065_v19 }
 0x225   : > { %v1056_v22 = vpop.f32.mrf.mxu1 }
 0x226   : > { %v1066_v23 = vadd.f32 %v1056_v22, %v611_v21 }
 0x227   : > { %v1494_v24 = vpop.f32.mrf.mxu1 }
 0x228   : > { %1069 = vst [vmem:[%s216_s26 + $0x8] sm:$0xff] %v1066_v23 }
 0x229   : > { %v1061_v25 = vpop.f32.mrf.mxu1 }
 0x22a   : > { %v1067_v26 = vadd.f32 %v1061_v25, %v612_v11 }
 0x22b   : > { %v1497_v27 = vpop.f32.mrf.mxu1 }
 0x22c   : > { %1070 = vst [vmem:[%s216_s26 + $0x10] sm:$0xf] %v1067_v26 }
 0x22d   : > { %1776 = shalt.err (!%p1773_p1)
}
 0x22e   : > { %s1777_s6 = scalar_lea.hbm %s2139_s29, 384  ;;  %s1781_s20 = scalar_lea.hbm %s2185_s3, 768 }
 0x22f   : > { %p1778_p5 = scmp.ne.s32.totalorder %s2139_s29, %s1777_s6  ;;  %p1782_p6 = scmp.lt.s32.totalorder %s2139_s29, %s2185_s3 }
 0x230   : > { %p1783_p13 = scmp.lt.s32.totalorder %s1781_s20, %s1777_s6 }
 0x231   : > { %p1779_p0 = pnand %p1778_p5, %p2201_p7 }
 0x232   : > { %p1784_p8 = por %p1783_p13, %p1782_p6 }
 0x233   : > { %p1780_p2 = pneg %p1779_p0 }
 0x235   : > { %p1785_p3 = pnand %p1784_p8, %p1780_p2 }
 0x237   : > { %1788 = shalt.err (!%p1785_p3)
}
 0x238   : > { %s1845_s23 = smov 128   ;;  %s1846_s26 = smov 256  }
 0x239   : > { %s1847_s19 = smov 8  }
 0x23a   : > { %1541 = dma.vmem_to_hbm [thread:$0]  (%p2201_p7), %s2134_s10, 384, %s2139_s29, %s1072_s30, %s1845_s23, %s1846_s26, %s1847_s19  }
 0x23b PF: > { %s1099_s7 = sand.u32 1, %s1819_s12   ;;  %p2202_p4 = scmp.ne.s32.totalorder %s2193_s25, 0 }
 0x23c   : > { %p2203_p11 = scmp.ge.s32.totalorder %s1831_s15, 2  ;;  %s1100_s9 = scalar_lea.sflag [#allocation4], %s1099_s7 }
 0x23e   : > { %p1555_p12 = pnand %p2203_p11, %p2202_p4 }
 0x240   : > { %p1556_p9 = pneg %p1555_p12 }
 0x242   : > { %1814 = dma.done.wait (%p1556_p9), %s1100_s9, 384  }
 0x243   : > { %1816 = vsyncadd (%p1556_p9), %s1100_s9, 4294966912  ;;  %p17_p10 = scmp.ge.s32.totalorder %s1893_s18, 4   ;;  %s2204_s12 = smov %s1823_s13 }
 0x244   : > { %s2205_s13 = smov %s1827_s14  ;;  %s2206_s14 = smov %s1905_s21 }
 0x245   : > { %s2207_s15 = smov %s1893_s18  ;;  %19 = sbr.rel (!%p17_p10) target bundleno = 6 (0x6), region = 86 }
 0x24a   :  { %1105 = vsyncpa [#allocation3], 1 }
 0x24b   :  { %1107 = vsyncpa [#allocation3 + $0x1], 1 }
 0x24c   :  { %1108 = vsyncpa [#allocation6], 1 }
 0x24d   :  { %1109 = vsyncpa [#allocation4], 1 }
 0x24e   :  { %1111 = vsyncpa [#allocation4 + $0x1], 1 }

</bundles_post_ra>
